<compile_context>
chip_gen: v6e
topology: v6e:2x2x1
jax: 0.10.0
libtpu: 0.0.40
codegen_flags: <defaults>
</compile_context>

<pallas_src>
import functools

import jax
import jax.numpy as jnp
from jax.experimental import pallas as pl
from jax.experimental.pallas import tpu as pltpu


def _round_up(x, m):
    return ((x + m - 1) // m) * m


def _sublane(dtype):
    # Sublane packing: 8 rows for 4-byte, 16 for 2-byte, 32 for 1-byte dtypes.
    return max(8, 32 // jnp.dtype(dtype).itemsize)


def _default_batch_tile():
    # Per-generation default: bigger batch tiles where VMEM allows
    # (v5e/v6e: 128 MiB physical), smaller on v7x (64 MiB).
    try:
        cap = pltpu.get_tpu_info().vmem_capacity_bytes
    except Exception:
        cap = 64 << 20
    return 512 if cap >= (100 << 20) else 256


def prepare_global_memory_weights(w_key, w_value, w_output, dtype=None):
    """One-time weight prep (call at parameter init, NOT per forward).

    Pads H/M up to lane-dense multiples of 128 and pre-transposes so the
    kernel uses canonical contractions (no per-step XLU transposes) and the
    per-call path does no HBM->HBM weight copies.

    For production, pass dtype=jnp.bfloat16 to halve weight HBM/VMEM bytes and
    use the fast bf16 MXU path (fp8 additionally possible on v7x only).
    """
    M, H = w_key.shape
    assert w_value.shape == (H, M) and w_output.shape == (H, H)
    Hp = _round_up(H, 128)
    Mp = _round_up(M, 128)
    if dtype is not None:
        w_key, w_value, w_output = (w.astype(dtype) for w in (w_key, w_value, w_output))
    wkT = jnp.pad(w_key.T, ((0, Hp - H), (0, Mp - M)))      # (Hp, Mp): logits = q @ wkT
    wvT = jnp.pad(w_value.T, ((0, Mp - M), (0, Hp - H)))    # (Mp, Hp): v = attn @ wvT
    woT = jnp.pad(w_output.T, ((0, Hp - H), (0, Hp - H)))   # (Hp, Hp): y = v @ woT
    return wkT, wvT, woT, M


def _make_kernel(m_actual, m_pad):
    """Fused key-proj -> masked softmax -> value-proj -> out-proj -> +res -> relu."""

    def kernel(q_ref, wk_ref, wv_ref, wo_ref, o_ref):
        q = q_ref[...]          # (TB, Hp)  native dtype
        wk = wk_ref[...]        # (Hp, Mp)  pre-transposed
        wv = wv_ref[...]        # (Mp, Hp)  pre-transposed
        wo = wo_ref[...]        # (Hp, Hp)  pre-transposed

        # Keep the largest matmul on the native weight-dtype MXU path
        # (avoids silent promotion of bf16 weights to f32).
        q_mm = q if q.dtype == wk.dtype else q.astype(wk.dtype)

        # logits = q @ W_key^T  (MXU, f32 accumulate)
        logits = jnp.dot(q_mm, wk, preferred_element_type=jnp.float32)   # (TB, Mp)

        # Mask zero-padded memory slots (static compile-time mask, f32).
        if m_pad != m_actual:
            slot = jax.lax.broadcasted_iota(jnp.int32, logits.shape, 1)
            logits = jnp.where(slot < m_actual, logits, jnp.float32(-1e30))

        # Numerically-stable softmax over the memory axis (torch dim=2).
        mx = jnp.max(logits, axis=-1, keepdims=True)
        e = jnp.exp(logits - mx)
        denom = jnp.sum(e, axis=-1, keepdims=True)
        attn = e * pl.reciprocal(denom, approx=False)                    # exact

        # v = attn @ W_val^T ; y = v @ W_out^T + q ; relu
        v = jnp.dot(attn.astype(wv.dtype), wv, preferred_element_type=jnp.float32)
        y = jnp.dot(v.astype(wo.dtype), wo, preferred_element_type=jnp.float32)
        y = y + q.astype(jnp.float32)
        o_ref[...] = jnp.maximum(y, 0.0).astype(o_ref.dtype)

    return kernel


@functools.partial(jax.jit, static_argnames=("memory_num", "batch_tile", "min_grid_steps"))
def global_memory_forward(query, wkT, wvT, woT, *, memory_num,
                          batch_tile=256, min_grid_steps=1):
    """query: (B, 1, H); wkT/wvT/woT from prepare_global_memory_weights().

    Returns (B, 1, H) = relu(out_proj(val_proj(softmax(key_proj(q)))) + q).
    """
    B, S, H = query.shape
    assert S == 1
    Hp, Mp = wkT.shape
    assert wvT.shape == (Mp, Hp) and woT.shape == (Hp, Hp)
    assert Hp >= H and Mp >= memory_num

    # Waste-aware, dtype-aware batch tiling.
    sublane = _sublane(query.dtype)
    n_tiles = max(-(-B // batch_tile), 1)
    if min_grid_steps > 1 and B >= min_grid_steps * sublane:
        n_tiles = max(n_tiles, min_grid_steps)          # >=2 steps for v7x megacore
    TB = _round_up(-(-B // n_tiles), sublane)
    Bp = _round_up(B, TB)
    grid = (Bp // TB,)

    q2 = query.reshape(B, H)
    if (Bp, Hp) != (B, H):
        q2 = jnp.pad(q2, ((0, Bp - B), (0, Hp - H)))

    # Explicit VMEM budget from real buffer sizes (+25% headroom, >= default).
    q_item = jnp.dtype(query.dtype).itemsize
    w_item = jnp.dtype(wkT.dtype).itemsize
    weight_bytes = (2 * Hp * Mp + Hp * Hp) * w_item      # single-buffered weights
    io_bytes = 2 * 2 * TB * Hp * q_item                  # q + out, double-buffered
    temp_bytes = 4 * TB * Mp * 4 + 3 * TB * Hp * 4       # f32 softmax temps + accumulators
    vmem_limit = int(1.25 * (weight_bytes + io_bytes + temp_bytes)) + (2 << 20)
    vmem_limit = min(max(vmem_limit, 32 << 20), 128 << 20)
    # TODO(synk): if weight_bytes alone exceeds ~48 MiB (v7x), switch to the
    # W_output-column / M-tiled variant described in the header.

    flops = 2 * Bp * (2 * Hp * Mp + Hp * Hp)
    bytes_accessed = 2 * Bp * Hp * q_item + weight_bytes

    out = pl.pallas_call(
        _make_kernel(memory_num, Mp),
        out_shape=jax.ShapeDtypeStruct((Bp, Hp), query.dtype),
        grid=grid,
        in_specs=[
            pl.BlockSpec((TB, Hp), lambda i: (i, 0)),                                   # q: batch-tiled
            pl.BlockSpec((Hp, Mp), lambda i: (0, 0), pipeline_mode=pl.Buffered(1)),     # W_key^T
            pl.BlockSpec((Mp, Hp), lambda i: (0, 0), pipeline_mode=pl.Buffered(1)),     # W_value^T
            pl.BlockSpec((Hp, Hp), lambda i: (0, 0), pipeline_mode=pl.Buffered(1)),     # W_output^T
        ],
        out_specs=pl.BlockSpec((TB, Hp), lambda i: (i, 0)),
        compiler_params=pltpu.CompilerParams(
            dimension_semantics=("parallel",),
            vmem_limit_bytes=vmem_limit),
        cost_estimate=pl.CostEstimate(
            flops=flops,
            transcendentals=Bp * Mp,
            bytes_accessed=bytes_accessed),
    )(q2, wkT, wvT, woT)

    return out[:B, :H].reshape(B, 1, H)


def _reference(query, w_key, w_value, w_output):
    x = query @ w_key.T
    attn = jax.nn.softmax(x, axis=2)
    x = attn @ w_value.T
    x = x @ w_output.T
    return jax.nn.relu(x + query)


if __name__ == "__main__":
    hidden_size = 32
    memory_num = 8
    batch = 2

    key = jax.random.PRNGKey(0)
    k_q, k_wk, k_wo = jax.random.split(key, 3)

    # Deterministic parameter init mirroring torch's uniform_(-0.1, 0.1),
    # with the value weight tied to the key weight as in initialize_weight().
    w_key = jax.random.uniform(k_wk, (memory_num, hidden_size),
                               minval=-0.1, maxval=0.1, dtype=jnp.float32)
    w_value = w_key.T
    w_output = jax.random.uniform(k_wo, (hidden_size, hidden_size),
                                  minval=-0.1, maxval=0.1, dtype=jnp.float32)

    query = jax.random.normal(k_q, (batch, 1, hidden_size), dtype=jnp.float32)

    # One-time weight prep (padding + transpose hoisted out of the forward).
    wkT, wvT, woT, m_actual = prepare_global_memory_weights(w_key, w_value, w_output)

    batch_tile = _default_batch_tile()
    # Request >=2 grid steps only for big batches (compute-bound): lets v7x's
    # 2 TCs both work; tiny/decode batches keep 1 step so weight HBM reads
    # are not duplicated per core.
    min_steps = 2 if batch >= 256 else 1

    out = global_memory_forward(query, wkT, wvT, woT, memory_num=m_actual,
                                batch_tile=batch_tile, min_grid_steps=min_steps)
    out = jax.block_until_ready(out)

    ref = _reference(query, w_key, w_value, w_output)
    assert out.shape == (batch, 1, hidden_size)
    assert jnp.allclose(out, ref, atol=1e-4, rtol=1e-4), "mismatch vs reference"

    print("KERNEL_OK")
</pallas_src>

<mosaic_0001>
module attributes {stable_mosaic.version = 11 : i64} {
  func.func @kernel(%arg0: i32, %arg1: memref<8x128xf32, #tpu.memory_space<vmem>>, %arg2: memref<128x128xf32, #tpu.memory_space<vmem>>, %arg3: memref<128x128xf32, #tpu.memory_space<vmem>>, %arg4: memref<128x128xf32, #tpu.memory_space<vmem>>, %arg5: memref<8x128xf32, #tpu.memory_space<vmem>>) attributes {dimension_semantics = [#tpu.dimension_semantics<parallel>], iteration_bounds = array<i64: 1>, scalar_prefetch = 0 : i64, scratch_operands = 0 : i64, tpu.core_type = #tpu.core_type<tc>, window_params = [{transform_indices = @transform_0, window_bounds = array<i64: 8, 128>}, {pipeline_mode = #tpu.pipeline_mode<synchronous>, transform_indices = @transform_1, window_bounds = array<i64: 128, 128>}, {pipeline_mode = #tpu.pipeline_mode<synchronous>, transform_indices = @transform_2, window_bounds = array<i64: 128, 128>}, {pipeline_mode = #tpu.pipeline_mode<synchronous>, transform_indices = @transform_3, window_bounds = array<i64: 128, 128>}, {transform_indices = @transform_4, window_bounds = array<i64: 8, 128>}]} {
    %c0 = arith.constant 0 : index
    %c0_0 = arith.constant 0 : index
    %0 = vector.load %arg1[%c0, %c0_0] : memref<8x128xf32, #tpu.memory_space<vmem>>, vector<8x128xf32>
    %c0_1 = arith.constant 0 : index
    %c0_2 = arith.constant 0 : index
    %1 = vector.load %arg2[%c0_1, %c0_2] : memref<128x128xf32, #tpu.memory_space<vmem>>, vector<128x128xf32>
    %c0_3 = arith.constant 0 : index
    %c0_4 = arith.constant 0 : index
    %2 = vector.load %arg3[%c0_3, %c0_4] : memref<128x128xf32, #tpu.memory_space<vmem>>, vector<128x128xf32>
    %c0_5 = arith.constant 0 : index
    %c0_6 = arith.constant 0 : index
    %3 = vector.load %arg4[%c0_5, %c0_6] : memref<128x128xf32, #tpu.memory_space<vmem>>, vector<128x128xf32>
    %cst = arith.constant dense<0.000000e+00> : vector<8x128xf32>
    %4 = tpu.matmul %0, %1, %cst {dimension_numbers = #tpu.dot_dimension_numbers<[1], [0], [0], [1], [0, 0, 1, 1], [], []>} : vector<8x128xf32>, vector<128x128xf32>, vector<8x128xf32> -> vector<8x128xf32>
    %5 = tpu.iota {dimensions = array<i32: 1>} : vector<8x128xi32>
    %c8_i32 = arith.constant 8 : i32
    %6 = vector.broadcast %c8_i32 : i32 to vector<8x128xi32>
    %7 = arith.cmpi slt, %5, %6 : vector<8x128xi32>
    %cst_7 = arith.constant -1.000000e+30 : f32
    %8 = vector.broadcast %cst_7 : f32 to vector<8x128xf32>
    %9 = arith.select %7, %4, %8 : vector<8x128xi1>, vector<8x128xf32>
    %cst_8 = arith.constant dense<0xFF800000> : vector<8xf32>
    %10 = vector.multi_reduction <maximumf>, %9, %cst_8 [1] : vector<8x128xf32> to vector<8xf32>
    %11 = vector.shape_cast %10 : vector<8xf32> to vector<8x1xf32>
    %12 = vector.broadcast %11 : vector<8x1xf32> to vector<8x128xf32>
    %13 = arith.subf %9, %12 : vector<8x128xf32>
    %14 = math.exp %13 : vector<8x128xf32>
    %cst_9 = arith.constant dense<0.000000e+00> : vector<8xf32>
    %15 = vector.multi_reduction <add>, %14, %cst_9 [1] : vector<8x128xf32> to vector<8xf32>
    %16 = vector.shape_cast %15 : vector<8xf32> to vector<8x1xf32>
    %17 = tpu.reciprocal %16 : vector<8x1xf32> -> vector<8x1xf32>
    %18 = vector.broadcast %17 : vector<8x1xf32> to vector<8x128xf32>
    %19 = arith.mulf %14, %18 : vector<8x128xf32>
    %cst_10 = arith.constant dense<0.000000e+00> : vector<8x128xf32>
    %20 = tpu.matmul %19, %2, %cst_10 {dimension_numbers = #tpu.dot_dimension_numbers<[1], [0], [0], [1], [0, 0, 1, 1], [], []>} : vector<8x128xf32>, vector<128x128xf32>, vector<8x128xf32> -> vector<8x128xf32>
    %cst_11 = arith.constant dense<0.000000e+00> : vector<8x128xf32>
    %21 = tpu.matmul %20, %3, %cst_11 {dimension_numbers = #tpu.dot_dimension_numbers<[1], [0], [0], [1], [0, 0, 1, 1], [], []>} : vector<8x128xf32>, vector<128x128xf32>, vector<8x128xf32> -> vector<8x128xf32>
    %22 = arith.addf %21, %0 : vector<8x128xf32>
    %cst_12 = arith.constant 0.000000e+00 : f32
    %23 = vector.broadcast %cst_12 : f32 to vector<8x128xf32>
    %24 = arith.maximumf %22, %23 : vector<8x128xf32>
    %c0_13 = arith.constant 0 : index
    %c0_14 = arith.constant 0 : index
    %25 = vector.load %arg5[%c0_13, %c0_14] : memref<8x128xf32, #tpu.memory_space<vmem>>, vector<8x128xf32>
    tpu.vector_store %arg5[%c0_13, %c0_14], %24 {strides = array<i32>} : memref<8x128xf32, #tpu.memory_space<vmem>>, vector<8x128xf32>,
    return
  }
  func.func @transform_0(%arg0: i32) -> (i32, i32) {
    %c0_i32 = arith.constant 0 : i32
    %c0_i32_0 = arith.constant 0 : i32
    return %arg0, %c0_i32 : i32, i32
  }
  func.func @transform_1(%arg0: i32) -> (i32, i32) {
    %c0_i32 = arith.constant 0 : i32
    %c0_i32_0 = arith.constant 0 : i32
    %c0_i32_1 = arith.constant 0 : i32
    return %c0_i32, %c0_i32_0 : i32, i32
  }
  func.func @transform_2(%arg0: i32) -> (i32, i32) {
    %c0_i32 = arith.constant 0 : i32
    %c0_i32_0 = arith.constant 0 : i32
    %c0_i32_1 = arith.constant 0 : i32
    return %c0_i32, %c0_i32_0 : i32, i32
  }
  func.func @transform_3(%arg0: i32) -> (i32, i32) {
    %c0_i32 = arith.constant 0 : i32
    %c0_i32_0 = arith.constant 0 : i32
    %c0_i32_1 = arith.constant 0 : i32
    return %c0_i32, %c0_i32_0 : i32, i32
  }
  func.func @transform_4(%arg0: i32) -> (i32, i32) {
    %c0_i32 = arith.constant 0 : i32
    %c0_i32_0 = arith.constant 0 : i32
    return %arg0, %c0_i32 : i32, i32
  }
}

</mosaic_0001>

<bundles_post_ra>
// kernel: global_memory_forward.1
= control target key start
LH: loop header
LB: loop body
LE: loop exit
PB: predicated region body
PF: predicated region fallthrough
CT: control target
= control target key end

     0   :  { %9 = vsyncpa [#allocation3], 0  ;;  %s678_s0 = inlined_call_operand.vmem [shape: f32[8,128], index: 0, kind: input, shape index: {}]   ;;  %s679_s1 = inlined_call_operand.hbm [shape: f32[128,128], index: 1, kind: input, shape index: {}]   ;;  %s680_s2 = inlined_call_operand.hbm [shape: f32[128,128], index: 2, kind: input, shape index: {}]   ;;  %s681_s3 = inlined_call_operand.hbm [shape: f32[128,128], index: 3, kind: input, shape index: {}]   ;;  %s682_s4 = inlined_call_operand.vmem [shape: f32[8,128], index: 4, kind: output, shape index: {}]  }
   0x1   :  { %10 = vsyncpa [#allocation5], 0  ;;  %s569_s15 = smov [#allocation4]   ;;  %s570_s17 = smov [#allocation2]  }
   0x2   :  { %s30_s16 = sshll.u32 %s569_s15, 4  ;;  %s18_s18 = sshll.u32 %s570_s17, 4  ;;  %s31_s16 = int_to_ptr.vmem [resolvable:$true] %s30_s16  ;;  %s19_s18 = int_to_ptr.vmem [resolvable:$true] %s18_s18 }
   0x3   :  { %s513_s19 = scalar_lea.vmem %s31_s16, 2048  ;;  %p518_p1 = scmp.lt.s32.totalorder %s31_s16, %s31_s16 }
   0x4   :  { %p514_p0 = scmp.ne.s32.totalorder %s31_s16, %s513_s19  ;;  %p519_p2 = scmp.lt.s32.totalorder %s513_s19, %s513_s19 }
   0x6   :  { %p520_p3 = por %p519_p2, %p518_p1 }
   0x8   :  { %p521_p4 = pnand %p520_p3, %p514_p0 }
   0xa   :  { %524 = shalt.err (!%p521_p4)
}
   0xb   :  { %s571_s20 = smov 128   ;;  %s572_s21 = smov 8  }
   0xc   :  { %36 = dma.hbm_to_vmem [thread:$0]  %s680_s2, 2048, %s31_s16, [#allocation5], %s571_s20, %s571_s20, %s572_s21  }
   0xd   :  { %s533_s24 = scalar_lea.vmem %s19_s18, 2048  ;;  %p538_p6 = scmp.lt.s32.totalorder %s19_s18, %s19_s18 }
   0xe   :  { %p534_p5 = scmp.ne.s32.totalorder %s19_s18, %s533_s24  ;;  %p539_p7 = scmp.lt.s32.totalorder %s533_s24, %s533_s24 }
  0x10   :  { %p540_p8 = por %p539_p7, %p538_p6 }
  0x12   :  { %p541_p9 = pnand %p540_p8, %p534_p5 }
  0x14   :  { %544 = shalt.err (!%p541_p9)
}
  0x15   :  { %24 = dma.hbm_to_vmem [thread:$0]  %s679_s1, 2048, %s19_s18, [#allocation3], %s571_s20, %s571_s20, %s572_s21  }
  0x16   :  { %s573_s27 = smov [#allocation6]  }
  0x17   :  { %s42_s28 = sshll.u32 %s573_s27, 4  ;;  %s43_s28 = int_to_ptr.vmem [resolvable:$true] %s42_s28 }
  0x18   :  { %s553_s29 = scalar_lea.vmem %s43_s28, 2048  ;;  %p558_p11 = scmp.lt.s32.totalorder %s43_s28, %s43_s28 }
  0x19   :  { %p554_p10 = scmp.ne.s32.totalorder %s43_s28, %s553_s29  ;;  %p559_p12 = scmp.lt.s32.totalorder %s553_s29, %s553_s29 }
  0x1b   :  { %p560_p13 = por %p559_p12, %p558_p11 }
  0x1d   :  { %p561_p0 = pnand %p560_p13, %p554_p10 }
  0x1f   :  { %564 = shalt.err (!%p561_p0)
}
  0x20   :  { %48 = dma.hbm_to_vmem [thread:$0]  %s681_s3, 2048, %s43_s28, [#allocation5], %s571_s20, %s571_s20, %s572_s21  }
  0x21   :  { %565 = dma.done.wait [#allocation3], 2048  }
  0x22   :  { %566 = vsyncadd [#allocation3], 4294965248 }
  0x23   :  { %567 = dma.done.wait [#allocation5], 4096  }
  0x24   :  { %568 = vsyncadd [#allocation5], 4294963200  ;;  %v574_v0 = vmov 0.0   ;;  %vm575_vm0 = vmmov 0   ;;  %v74_v1 = vld [vmem:[#allocation2 + $0x78] sm:$0xff]  ;;  %v73_v2 = vld [vmem:[#allocation2 + $0x70] sm:$0xff]  ;;  %v177_v18 = vlaneseq }
  0x25   :  { %389 = vmatprep.subr.mxu0 %v574_v0  ;;  %421 = vmatprep.mubr.msk.f32.mxu0 %vm575_vm0, %v574_v0  ;;  %v72_v3 = vld [vmem:[#allocation2 + $0x68] sm:$0xff]  ;;  %v71_v4 = vld [vmem:[#allocation2 + $0x60] sm:$0xff]  ;;  %v70_v5 = vld [vmem:[#allocation2 + $0x58] sm:$0xff] }
  0x26   :  { %424 = vmatprep.subr.mxu1 %v574_v0  ;;  %456 = vmatprep.mubr.msk.f32.mxu1 %vm575_vm0, %v574_v0  ;;  %v69_v6 = vld [vmem:[#allocation2 + $0x50] sm:$0xff]  ;;  %v68_v7 = vld [vmem:[#allocation2 + $0x48] sm:$0xff]  ;;  %v67_v8 = vld [vmem:[#allocation2 + $0x40] sm:$0xff]  ;;  %v178_v19 = vand.u32 127, %v177_v18 }
  0x27   :  { %390 = vmatpush3.msra.mxu0 %v74_v1  ;;  %v66_v9 = vld [vmem:[#allocation2 + $0x38] sm:$0xff]  ;;  %v65_v10 = vld [vmem:[#allocation2 + $0x30] sm:$0xff]  ;;  %v64_v11 = vld [vmem:[#allocation2 + $0x28] sm:$0xff] }
  0x28   :  { %391 = vmatprep.subr.mxu0 %v574_v0  ;;  %v63_v12 = vld [vmem:[#allocation2 + $0x20] sm:$0xff]  ;;  %v62_v13 = vld [vmem:[#allocation2 + $0x18] sm:$0xff]  ;;  %v61_v14 = vld [vmem:[#allocation2 + $0x10] sm:$0xff]  ;;  %vm179_vm1 = vcmp.lt.s32.totalorder %v178_v19, 8 }
  0x29   :  { %392 = vmatpush3.msra.mxu0 %v73_v2  ;;  %v60_v15 = vld [vmem:[#allocation2 + $0x8] sm:$0xff]  ;;  %v59_v16 = vld [vmem:[#allocation2] sm:$0xff]  ;;  %v90_v23 = vld [vmem:[#allocation4 + $0x78] sm:$0xff] }
  0x2a   :  { %393 = vmatprep.subr.mxu0 %v574_v0  ;;  %v633_v17 = vld [vmem:[%s678_s0] sm:$0xff]  ;;  %v89_v24 = vld [vmem:[#allocation4 + $0x70] sm:$0xff]  ;;  %425 = vmatpush3.msra.mxu1 %v90_v23  ;;  %v88_v25 = vld [vmem:[#allocation4 + $0x68] sm:$0xff] }
  0x2b   :  { %394 = vmatpush3.msra.mxu0 %v72_v3  ;;  %426 = vmatprep.subr.mxu1 %v574_v0  ;;  %v87_v26 = vld [vmem:[#allocation4 + $0x60] sm:$0xff]  ;;  %v86_v27 = vld [vmem:[#allocation4 + $0x58] sm:$0xff]  ;;  %v85_v28 = vld [vmem:[#allocation4 + $0x50] sm:$0xff] }
  0x2c   :  { %395 = vmatprep.subr.mxu0 %v574_v0  ;;  %427 = vmatpush3.msra.mxu1 %v89_v24  ;;  %v84_v29 = vld [vmem:[#allocation4 + $0x48] sm:$0xff]  ;;  %v83_v30 = vld [vmem:[#allocation4 + $0x40] sm:$0xff]  ;;  %v82_v35 = vld [vmem:[#allocation4 + $0x38] sm:$0xff] }
  0x2d   :  { %396 = vmatpush3.msra.mxu0 %v71_v4  ;;  %428 = vmatprep.subr.mxu1 %v574_v0  ;;  %v81_v36 = vld [vmem:[#allocation4 + $0x30] sm:$0xff]  ;;  %v80_v37 = vld [vmem:[#allocation4 + $0x28] sm:$0xff]  ;;  %v79_v38 = vld [vmem:[#allocation4 + $0x20] sm:$0xff] }
  0x2e   :  { %397 = vmatprep.subr.mxu0 %v574_v0  ;;  %429 = vmatpush3.msra.mxu1 %v88_v25  ;;  %v78_v39 = vld [vmem:[#allocation4 + $0x18] sm:$0xff]  ;;  %v77_v40 = vld [vmem:[#allocation4 + $0x10] sm:$0xff]  ;;  %v76_v41 = vld [vmem:[#allocation4 + $0x8] sm:$0xff] }
  0x2f   :  { %398 = vmatpush3.msra.mxu0 %v70_v5  ;;  %430 = vmatprep.subr.mxu1 %v574_v0  ;;  %v75_v42 = vld [vmem:[#allocation4] sm:$0xff]  ;;  %v106_v43 = vld [vmem:[#allocation6 + $0x78] sm:$0xff]  ;;  %v105_v44 = vld [vmem:[#allocation6 + $0x70] sm:$0xff] }
  0x30   :  { %399 = vmatprep.subr.mxu0 %v574_v0  ;;  %431 = vmatpush3.msra.mxu1 %v87_v26  ;;  %v104_v45 = vld [vmem:[#allocation6 + $0x68] sm:$0xff]  ;;  %v103_v46 = vld [vmem:[#allocation6 + $0x60] sm:$0xff]  ;;  %v102_v47 = vld [vmem:[#allocation6 + $0x58] sm:$0xff] }
  0x31   :  { %400 = vmatpush3.msra.mxu0 %v69_v6  ;;  %432 = vmatprep.subr.mxu1 %v574_v0  ;;  %v101_v48 = vld [vmem:[#allocation6 + $0x50] sm:$0xff]  ;;  %v100_v49 = vld [vmem:[#allocation6 + $0x48] sm:$0xff]  ;;  %v99_v50 = vld [vmem:[#allocation6 + $0x40] sm:$0xff] }
  0x32   :  { %401 = vmatprep.subr.mxu0 %v574_v0  ;;  %433 = vmatpush3.msra.mxu1 %v86_v27  ;;  %v98_v51 = vld [vmem:[#allocation6 + $0x38] sm:$0xff]  ;;  %v97_v52 = vld [vmem:[#allocation6 + $0x30] sm:$0xff]  ;;  %v96_v53 = vld [vmem:[#allocation6 + $0x28] sm:$0xff] }
  0x33   :  { %402 = vmatpush3.msra.mxu0 %v68_v7  ;;  %434 = vmatprep.subr.mxu1 %v574_v0  ;;  %v95_v54 = vld [vmem:[#allocation6 + $0x20] sm:$0xff]  ;;  %v94_v55 = vld [vmem:[#allocation6 + $0x18] sm:$0xff]  ;;  %v93_v56 = vld [vmem:[#allocation6 + $0x10] sm:$0xff] }
  0x34   :  { %403 = vmatprep.subr.mxu0 %v574_v0  ;;  %435 = vmatpush3.msra.mxu1 %v85_v28  ;;  %v92_v57 = vld [vmem:[#allocation6 + $0x8] sm:$0xff]  ;;  %v91_v61 = vld [vmem:[#allocation6] sm:$0xff] }
  0x35   :  { %404 = vmatpush3.msra.mxu0 %v67_v8  ;;  %436 = vmatprep.subr.mxu1 %v574_v0 }
  0x36   :  { %405 = vmatprep.subr.mxu0 %v574_v0  ;;  %437 = vmatpush3.msra.mxu1 %v84_v29 }
  0x37   :  { %406 = vmatpush3.msra.mxu0 %v66_v9  ;;  %438 = vmatprep.subr.mxu1 %v574_v0 }
  0x38   :  { %407 = vmatprep.subr.mxu0 %v574_v0  ;;  %439 = vmatpush3.msra.mxu1 %v83_v30 }
  0x39   :  { %408 = vmatpush3.msra.mxu0 %v65_v10  ;;  %440 = vmatprep.subr.mxu1 %v574_v0 }
  0x3a   :  { %409 = vmatprep.subr.mxu0 %v574_v0  ;;  %441 = vmatpush3.msra.mxu1 %v82_v35 }
  0x3b   :  { %410 = vmatpush3.msra.mxu0 %v64_v11  ;;  %442 = vmatprep.subr.mxu1 %v574_v0 }
  0x3c   :  { %411 = vmatprep.subr.mxu0 %v574_v0  ;;  %443 = vmatpush3.msra.mxu1 %v81_v36 }
  0x3d   :  { %412 = vmatpush3.msra.mxu0 %v63_v12  ;;  %444 = vmatprep.subr.mxu1 %v574_v0 }
  0x3e   :  { %413 = vmatprep.subr.mxu0 %v574_v0  ;;  %445 = vmatpush3.msra.mxu1 %v80_v37 }
  0x3f   :  { %414 = vmatpush3.msra.mxu0 %v62_v13  ;;  %446 = vmatprep.subr.mxu1 %v574_v0 }
  0x40   :  { %415 = vmatprep.subr.mxu0 %v574_v0  ;;  %447 = vmatpush3.msra.mxu1 %v79_v38 }
  0x41   :  { %416 = vmatpush3.msra.mxu0 %v61_v14  ;;  %448 = vmatprep.subr.mxu1 %v574_v0 }
  0x42   :  { %417 = vmatprep.subr.mxu0 %v574_v0  ;;  %449 = vmatpush3.msra.mxu1 %v78_v39 }
  0x43   :  { %418 = vmatpush3.msra.mxu0 %v60_v15  ;;  %450 = vmatprep.subr.mxu1 %v574_v0 }
  0x44   :  { %419 = vmatprep.subr.mxu0 %v574_v0  ;;  %451 = vmatpush3.msra.mxu1 %v77_v40 }
  0x45   :  { %420 = vmatpush3.msra.mxu0 %v59_v16  ;;  %452 = vmatprep.subr.mxu1 %v574_v0 }
  0x46   :  { %422 = vmatmul.mubr.f32.vlgmr.msra.gmra.mxu0 %v633_v17  ;;  %459 = vmatprep.subr.mxu0 %v574_v0 }
  0x47   :  { %491 = vmatprep.mubr.msk.f32.mxu0 %vm575_vm0, %v574_v0  ;;  %453 = vmatpush3.msra.mxu1 %v76_v41 }
  0x48   :  { %454 = vmatprep.subr.mxu1 %v574_v0  ;;  %460 = vmatpush3.msra.mxu0 %v106_v43 }
  0x49   :  { %455 = vmatpush3.msra.mxu1 %v75_v42  ;;  %461 = vmatprep.subr.mxu0 %v574_v0 }
  0x4a   :  { %462 = vmatpush3.msra.mxu0 %v105_v44 }
  0x4b   :  { %463 = vmatprep.subr.mxu0 %v574_v0 }
  0x4c   :  { %464 = vmatpush3.msra.mxu0 %v104_v45 }
  0x4d   :  { %465 = vmatprep.subr.mxu0 %v574_v0 }
  0x4e   :  { %466 = vmatpush3.msra.mxu0 %v103_v46 }
  0x4f   :  { %467 = vmatprep.subr.mxu0 %v574_v0 }
  0x50   :  { %468 = vmatpush3.msra.mxu0 %v102_v47 }
  0x51   :  { %469 = vmatprep.subr.mxu0 %v574_v0 }
  0x52   :  { %470 = vmatpush3.msra.mxu0 %v101_v48 }
  0x53   :  { %471 = vmatprep.subr.mxu0 %v574_v0 }
  0x54   :  { %472 = vmatpush3.msra.mxu0 %v100_v49 }
  0x55   :  { %473 = vmatprep.subr.mxu0 %v574_v0 }
  0x56   :  { %474 = vmatpush3.msra.mxu0 %v99_v50 }
  0x57   :  { %475 = vmatprep.subr.mxu0 %v574_v0 }
  0x58   :  { %476 = vmatpush3.msra.mxu0 %v98_v51 }
  0x59   :  { %477 = vmatprep.subr.mxu0 %v574_v0 }
  0x5a   :  { %478 = vmatpush3.msra.mxu0 %v97_v52 }
  0x5b   :  { %479 = vmatprep.subr.mxu0 %v574_v0 }
  0x5c   :  { %480 = vmatpush3.msra.mxu0 %v96_v53 }
  0x5d   :  { %481 = vmatprep.subr.mxu0 %v574_v0 }
  0x5e   :  { %482 = vmatpush3.msra.mxu0 %v95_v54 }
  0x5f   :  { %483 = vmatprep.subr.mxu0 %v574_v0 }
  0x60   :  { %484 = vmatpush3.msra.mxu0 %v94_v55 }
  0x61   :  { %485 = vmatprep.subr.mxu0 %v574_v0 }
  0x62   :  { %486 = vmatpush3.msra.mxu0 %v93_v56 }
  0x63   :  { %487 = vmatprep.subr.mxu0 %v574_v0 }
  0x64   :  { %488 = vmatpush3.msra.mxu0 %v92_v57 }
  0x65   :  { %489 = vmatprep.subr.mxu0 %v574_v0 }
  0x66   :  { %490 = vmatpush3.msra.mxu0 %v91_v61 }
 0x106   :  { %v173_v20 = vpop.f32.mrf.mxu0 }
 0x107   :  { %v180_v21 = vsel %vm179_vm1, %v173_v20, -1e+30 }
 0x108   :  { %181 = vmax.xlane.f32.xlu0 %v180_v21  ;;  %v423_v22 = vpop.f32.mrf.mxu0 }
 0x191   :  { %v182_v31 = vpop.xlane.xlu0 %181 }
 0x192   :  { %v183_v32 = vsub.f32 %v180_v21, %v182_v31 }
 0x194   :  { %v184_v33 = vmul.f32 1.442695, %v183_v32 }
 0x196   :  { %501 = vpow2.f32 %v184_v33 }
 0x1a3   :  { %v648_v34 = vpop.eup %501 }
 0x1a4   :  { %186 = vadd.xlane.f32.xlu0 %v648_v34 }
 0x22d   :  { %v187_v58 = vpop.xlane.xlu0 %186 }
 0x22e   :  { %503 = vrcp.f32 %v187_v58 }
 0x23b   :  { %v504_v59 = vpop.eup %503 }
 0x23c   :  { %v189_v60 = vmul.f32 %v504_v59, %v648_v34 }
 0x23e   :  { %457 = vmatmul.mubr.f32.vlgmr.msra.gmra.mxu1 %v189_v60 }
 0x2fe   :  { %v256_v62 = vpop.f32.mrf.mxu1 }
 0x2ff   :  { %492 = vmatmul.mubr.f32.vlgmr.msra.gmra.mxu0 %v256_v62 }
 0x300   :  { %v458_v63 = vpop.f32.mrf.mxu1 }
 0x3bf   :  { %v326_v1 = vpop.f32.mrf.mxu0 }
 0x3c0   :  { %v327_v2 = vadd.f32 %v326_v1, %v633_v17 }
 0x3c1   :  { %v493_v3 = vpop.f32.mrf.mxu0 }
 0x3c2   :  { %v330_v4 = vmax.f32 %v327_v2, 0.0 }
 0x3c4   :  { %331 = vst [vmem:[%s682_s4] sm:$0xff] %v330_v4 }
 0x3c5   :  { %336 = vsyncpa [#allocation3], 1 }
 0x3c6   :  { %337 = vsyncpa [#allocation5], 1 }

</bundles_post_ra>
